<compile_context>
chip_gen: v7x
topology: tpu7x:2x2x1
jax: 0.10.0
libtpu: 0.0.40
codegen_flags: <defaults>
</compile_context>

<pallas_src>
import functools
import math

import jax
import jax.numpy as jnp
from jax.experimental import pallas as pl
from jax.experimental.pallas import tpu as pltpu


# --------------------------------------------------------------------------- #
# Per-generation VMEM budgets (v7x: 64 MiB/TC; v5e/v6e: 128 MiB).
# --------------------------------------------------------------------------- #
@functools.lru_cache(maxsize=1)
def _vmem_config():
    cap = 64 * 1024 * 1024                       # conservative default (v7x-class)
    try:
        info = pltpu.get_tpu_info()
        cap = int(getattr(info, "vmem_capacity_bytes", cap)) or cap
    except Exception:
        pass
    if cap <= 64 * 1024 * 1024:                  # v7x: keep live set well under 64 MiB
        return {"vmem_limit": 48 * 1024 * 1024, "block_budget": 4 * 1024 * 1024}
    return {"vmem_limit": 64 * 1024 * 1024, "block_budget": 8 * 1024 * 1024}


# Graceful-degradation switches (flip off if an optimized kernel fails to lower).
_FUSED_MERGE_OK = True
_FAST_MERGE_OK = True


# ----------------------------- Pallas kernels ------------------------------ #

def _conv1x1_kernel(x_ref, w_ref, b_ref, o_ref):
    # x: (1, Cin, T) f32   w: (Cout, Cin) bf16   b: (Cout, 1) f32
    # o: (1, Cout, T) bf16 -- bf16 writeback halves HBM traffic; f32 accumulate.
    x = x_ref[0].astype(jnp.bfloat16)
    y = jnp.dot(w_ref[...], x, preferred_element_type=jnp.float32)
    o_ref[0] = (y + b_ref[...]).astype(o_ref.dtype)


def _upsample_add_kernel_fast(a_ref, at_ref, bt_ref, x_ref, y_ref, o_ref):
    # Separable bilinear upsample + add.  Row interp and col interp are each a
    # single big 2-D bf16 MXU matmul (M = tc*Win / tc*Hout); the two small
    # minor-dim transposes go to the XLU.  a_ref is unused (shared specs).
    del a_ref
    tc, hin, win = x_ref.shape[1], x_ref.shape[2], x_ref.shape[3]
    hout, wout = o_ref.shape[2], o_ref.shape[3]

    x = x_ref[0].astype(jnp.float32)                            # (tc, Hin, Win)
    xt = jnp.swapaxes(x, -1, -2).reshape(tc * win, hin)         # (tc*Win, Hin)
    r = jnp.dot(xt.astype(jnp.bfloat16),
                at_ref[...].astype(jnp.bfloat16),
                preferred_element_type=jnp.float32)             # (tc*Win, Hout)
    rt = jnp.swapaxes(r.reshape(tc, win, hout), -1, -2)         # (tc, Hout, Win)
    up = jnp.dot(rt.reshape(tc * hout, win).astype(jnp.bfloat16),
                 bt_ref[...].astype(jnp.bfloat16),
                 preferred_element_type=jnp.float32)            # (tc*Hout, Wout)
    up = up.reshape(tc, hout, wout)
    o_ref[0] = (up + y_ref[0].astype(jnp.float32)).astype(o_ref.dtype)


def _upsample_add_kernel_safe(a_ref, at_ref, bt_ref, x_ref, y_ref, o_ref):
    # Fallback formulation (broadcast + channel-batched matmul) known to lower
    # on all generations; only used if the fast kernel fails to lower.
    del at_ref
    tc, hin, win = x_ref.shape[1], x_ref.shape[2], x_ref.shape[3]
    hout, wout = o_ref.shape[2], o_ref.shape[3]

    x = x_ref[0].astype(jnp.float32)
    t = jnp.dot(x.reshape(tc * hin, win).astype(jnp.bfloat16),
                bt_ref[...].astype(jnp.bfloat16),
                preferred_element_type=jnp.float32).reshape(tc, hin, wout)
    a_b = jnp.broadcast_to(a_ref[...], (tc, hout, hin))
    up = jnp.einsum('coi,cip->cop', a_b, t, preferred_element_type=jnp.float32)
    o_ref[0] = (up + y_ref[0].astype(jnp.float32)).astype(o_ref.dtype)


def _fused_conv_merge_kernel(at_ref, bt_ref, w_ref, b_ref, x_ref, f_ref, o_ref):
    # Fully fused merge: the fine level's lateral 1x1 conv is computed in-kernel
    # ((tc,Cin)@(Cin,Hout*Wout) on the MXU) from the RAW fine feature, then the
    # coarse block is bilinearly upsampled (separable, two big matmuls) and
    # added.  Removes the HBM write+read of the conv'ed fine level.
    tc, hin, win = x_ref.shape[1], x_ref.shape[2], x_ref.shape[3]
    hout, wout = o_ref.shape[2], o_ref.shape[3]

    # lateral conv (fused)
    f = f_ref[0].astype(jnp.bfloat16)                           # (Cin, Hout*Wout)
    lat = jnp.dot(w_ref[...], f, preferred_element_type=jnp.float32) + b_ref[...]
    lat = lat.reshape(tc, hout, wout)

    # separable bilinear upsample of the coarse block
    x = x_ref[0].astype(jnp.float32)
    xt = jnp.swapaxes(x, -1, -2).reshape(tc * win, hin)
    r = jnp.dot(xt.astype(jnp.bfloat16), at_ref[...].astype(jnp.bfloat16),
                preferred_element_type=jnp.float32)
    rt = jnp.swapaxes(r.reshape(tc, win, hout), -1, -2)
    up = jnp.dot(rt.reshape(tc * hout, win).astype(jnp.bfloat16),
                 bt_ref[...].astype(jnp.bfloat16),
                 preferred_element_type=jnp.float32).reshape(tc, hout, wout)

    o_ref[0] = (up + lat).astype(o_ref.dtype)


# ------------------------------ tile sizing -------------------------------- #

def _pick_hw_tile(cin, cout, hw, in_itemsize, budget, t_max=2048):
    # double-buffered f32 input + bf16 output columns per spatial position
    per_col = 2 * (cin * in_itemsize + cout * 2)
    t = min(t_max, budget // max(per_col, 1))
    if t >= hw:
        return hw
    t = max(256, (t // 256) * 256)
    return min(t, hw)


def _merge_per_channel_bytes(hin, win, hout, wout):
    blk = 2 * 2 * (hin * win + 2 * hout * wout)               # bf16 blocks x2 buffers
    tmp = 4 * (hin * win + 2 * win * hout + 3 * hout * wout)  # live f32 temporaries
    return blk + tmp


def _pick_channel_tile(c, hin, win, hout, wout, budget):
    per_ch = _merge_per_channel_bytes(hin, win, hout, wout)
    tc = budget // max(per_ch, 1)
    if tc >= c:
        return c
    return min(c, max(8, (tc // 8) * 8))


# ----------------------------- wrappers (glue) ------------------------------ #

def conv1x1_nchw(x, w_bf16, b, cfg):
    """1x1 Conv2d in NCHW: (Cout,Cin) @ (Cin, H*W) per batch, tiled over H*W."""
    n, cin, h, wd = x.shape
    cout = w_bf16.shape[0]
    hw = h * wd
    t = _pick_hw_tile(cin, cout, hw, x.dtype.itemsize, cfg["block_budget"])

    x3 = x.reshape(n, cin, hw)
    b2 = b.reshape(cout, 1)
    grid = (n, pl.cdiv(hw, t))          # >=2 steps via the batch axis (megacore)

    cost = pl.CostEstimate(
        flops=2 * n * hw * cin * cout,
        transcendentals=0,
        bytes_accessed=int(x.size * x.dtype.itemsize + w_bf16.size * 2
                           + b.size * 4 + n * cout * hw * 2))

    out = pl.pallas_call(
        _conv1x1_kernel,
        out_shape=jax.ShapeDtypeStruct((n, cout, hw), jnp.bfloat16),
        grid=grid,
        in_specs=[pl.BlockSpec((1, cin, t), lambda i, j: (i, 0, j)),
                  pl.BlockSpec((cout, cin), lambda i, j: (0, 0)),
                  pl.BlockSpec((cout, 1), lambda i, j: (0, 0))],
        out_specs=pl.BlockSpec((1, cout, t), lambda i, j: (i, 0, j)),
        compiler_params=pltpu.CompilerParams(
            dimension_semantics=("parallel", "parallel"),
            vmem_limit_bytes=cfg["vmem_limit"]),
        cost_estimate=cost,
    )(x3, w_bf16, b2)
    return out.reshape(n, cout, h, wd)


def upsample_add(coarse, fine, A, At, Bt, cfg):
    """F.upsample(coarse, (Hout,Wout), 'bilinear') + fine, fused & separable."""
    global _FAST_MERGE_OK
    n, c, hin, win = coarse.shape
    _, _, hout, wout = fine.shape
    tc = _pick_channel_tile(c, hin, win, hout, wout, cfg["block_budget"])
    grid = (n, pl.cdiv(c, tc))

    cost = pl.CostEstimate(
        flops=2 * n * c * (hin * win * hout + hout * win * wout),
        transcendentals=0,
        bytes_accessed=int((coarse.size + 2 * fine.size) * 2
                           + (A.size + At.size + Bt.size) * 4))

    def call(kernel):
        return pl.pallas_call(
            kernel,
            out_shape=jax.ShapeDtypeStruct(fine.shape, jnp.bfloat16),
            grid=grid,
            in_specs=[pl.BlockSpec((hout, hin), lambda i, j: (0, 0)),   # A
                      pl.BlockSpec((hin, hout), lambda i, j: (0, 0)),   # A^T
                      pl.BlockSpec((win, wout), lambda i, j: (0, 0)),   # B^T
                      pl.BlockSpec((1, tc, hin, win), lambda i, j: (i, j, 0, 0)),
                      pl.BlockSpec((1, tc, hout, wout), lambda i, j: (i, j, 0, 0))],
            out_specs=pl.BlockSpec((1, tc, hout, wout), lambda i, j: (i, j, 0, 0)),
            compiler_params=pltpu.CompilerParams(
                dimension_semantics=("parallel", "parallel"),
                vmem_limit_bytes=cfg["vmem_limit"]),
            cost_estimate=cost,
        )(A, At, Bt, coarse, fine)

    if _FAST_MERGE_OK:
        try:
            return call(_upsample_add_kernel_fast)
        except Exception:
            _FAST_MERGE_OK = False
    return call(_upsample_add_kernel_safe)


def _fused_merge_or_none(coarse, fine_raw, w_bf16, b, At, Bt, cfg):
    """Build the fused (conv+upsample+add) call, or None if it can't fit VMEM."""
    n, _, hin, win = coarse.shape
    _, cin, hout, wout = fine_raw.shape
    cout = w_bf16.shape[0]
    hw = hout * wout

    budget = cfg["block_budget"]
    fixed = 2 * cin * hw * fine_raw.dtype.itemsize        # resident raw-fine block
    per_ch = _merge_per_channel_bytes(hin, win, hout, wout) + 4 * cin
    min_ch = min(8, cout)
    if fixed + min_ch * per_ch > 2 * budget:
        return None                                        # fall back to 2 kernels
    avail = max(budget - fixed, min_ch * per_ch)
    tc = avail // per_ch
    tc = cout if tc >= cout else min(cout, max(min_ch, (tc // 8) * 8))

    f3 = fine_raw.reshape(n, cin, hw)
    b2 = b.reshape(cout, 1)
    grid = (n, pl.cdiv(cout, tc))

    cost = pl.CostEstimate(
        flops=2 * n * (cout * hw * cin
                       + cout * (hin * win * hout + hout * win * wout)),
        transcendentals=0,
        bytes_accessed=int(fine_raw.size * fine_raw.dtype.itemsize
                           + coarse.size * 2 + n * cout * hw * 2
                           + w_bf16.size * 2))

    def run():
        return pl.pallas_call(
            _fused_conv_merge_kernel,
            out_shape=jax.ShapeDtypeStruct((n, cout, hout, wout), jnp.bfloat16),
            grid=grid,
            in_specs=[pl.BlockSpec((hin, hout), lambda i, j: (0, 0)),     # A^T
                      pl.BlockSpec((win, wout), lambda i, j: (0, 0)),     # B^T
                      pl.BlockSpec((tc, cin), lambda i, j: (j, 0)),       # W slice
                      pl.BlockSpec((tc, 1), lambda i, j: (j, 0)),         # bias slice
                      pl.BlockSpec((1, tc, hin, win), lambda i, j: (i, j, 0, 0)),
                      pl.BlockSpec((1, cin, hw), lambda i, j: (i, 0, 0))],  # raw fine
            out_specs=pl.BlockSpec((1, tc, hout, wout), lambda i, j: (i, j, 0, 0)),
            compiler_params=pltpu.CompilerParams(
                dimension_semantics=("parallel", "parallel"),
                vmem_limit_bytes=cfg["vmem_limit"]),
            cost_estimate=cost,
        )(At, Bt, w_bf16, b2, coarse, f3)
    return run


def merge_level(coarse, fine_raw, w_bf16, b, A, At, Bt, cfg):
    """newP[i+1] = bilinear_upsample(newP[i]) + conv1x1(features[i+1])."""
    global _FUSED_MERGE_OK
    if _FUSED_MERGE_OK:
        run = _fused_merge_or_none(coarse, fine_raw, w_bf16, b, At, Bt, cfg)
        if run is not None:
            try:
                return run()
            except Exception:
                _FUSED_MERGE_OK = False   # unsupported lowering on this gen
    fine = conv1x1_nchw(fine_raw, w_bf16, b, cfg)
    return upsample_add(coarse, fine, A, At, Bt, cfg)


# --------------------------- bilinear interp weights ------------------------ #

@functools.lru_cache(maxsize=None)
def _bilinear_weights(out_size, in_size, align_corners=False):
    """(out_size, in_size) bilinear interpolation matrix (<=2 nonzeros/row)."""
    if out_size == in_size:
        return jnp.eye(out_size, dtype=jnp.float32)
    i = jnp.arange(out_size, dtype=jnp.float32)
    if align_corners:
        if out_size == 1:
            src = jnp.zeros((1,), jnp.float32)
        else:
            src = i * ((in_size - 1) / (out_size - 1))
    else:
        src = (i + 0.5) * (in_size / out_size) - 0.5
        src = jnp.clip(src, 0.0, float(in_size - 1))
    p0 = jnp.floor(src).astype(jnp.int32)
    p1 = jnp.minimum(p0 + 1, in_size - 1)
    w1 = src - p0.astype(jnp.float32)
    w0 = 1.0 - w1
    m = jnp.zeros((out_size, in_size), jnp.float32)
    rows = jnp.arange(out_size)
    m = m.at[rows, p0].add(w0)
    m = m.at[rows, p1].add(w1)
    return m


# --------------------------------- module ----------------------------------- #

class FPNPallas:
    """Pallas re-implementation of FPN.forward's feature path (NCHW in/out)."""

    def __init__(self, num_classes, in_channels=(512,), feat_strides=(16,),
                 out_channel=256, is_loss_ave=True, align_corners=False,
                 key=None):
        assert len(in_channels) == len(feat_strides), \
            'The length of features in_channels not equal feat_stride length !'
        self.feat_strides = feat_strides
        self.is_loss_ave = is_loss_ave
        self.out_channel = out_channel
        # align_corners=False matches F.upsample's modern default; set True to
        # reproduce legacy (pre-0.4) PyTorch bilinear semantics.
        self.align_corners = align_corners
        self._cfg = _vmem_config()
        key = jax.random.PRNGKey(0) if key is None else key

        # Conv2d(in_channel, out_channel, kernel_size=1):
        #   weight ~ N(0, sqrt(2 / (1*1*out_channel))), bias = 0.5
        n = 1 * 1 * out_channel
        std = math.sqrt(2.0 / n)
        self.weights_bf16, self.biases = [], []
        for cin in in_channels:
            key, sub = jax.random.split(key)
            w = jax.random.normal(sub, (out_channel, cin), jnp.float32) * std
            self.weights_bf16.append(w.astype(jnp.bfloat16))   # MXU operand dtype
            self.biases.append(jnp.full((out_channel,), 0.5, jnp.float32))

        self._interp_cache = {}
        # TODO(synk): RPN_Units (anchors / proposal layer / losses) come from an
        # external RPN module not provided in this file; not implemented.

    def _interp(self, hout, wout, hin, win):
        k = (hout, wout, hin, win)
        if k not in self._interp_cache:
            A = _bilinear_weights(hout, hin, self.align_corners)   # (Hout, Hin)
            B = _bilinear_weights(wout, win, self.align_corners)   # (Wout, Win)
            self._interp_cache[k] = (A, jnp.asarray(A.T), jnp.asarray(B.T))
        return self._interp_cache[k]

    def __call__(self, features_nchw, im_info=None, gt_boxes=None,
                 gt_ishard=None, dontcare_areas=None):
        L = len(features_nchw)
        assert L == len(self.feat_strides), \
            'The numbers of features not equal feat_stride length !'
        cfg = self._cfg
        newP = [None] * L
        newP[0] = conv1x1_nchw(features_nchw[0], self.weights_bf16[0],
                               self.biases[0], cfg)
        for i in range(L - 1):
            _, _, hin, win = newP[i].shape
            _, _, hout, wout = features_nchw[i + 1].shape
            A, At, Bt = self._interp(hout, wout, hin, win)
            newP[i + 1] = merge_level(newP[i], features_nchw[i + 1],
                                      self.weights_bf16[i + 1],
                                      self.biases[i + 1], A, At, Bt, cfg)
        # Pyramid is kept bf16 in HBM (halves traffic between kernels); upcast
        # once at the end to match the PyTorch module's f32 outputs.
        return [p.astype(jnp.float32) for p in newP]


# ------------------------- pure-JAX reference check ------------------------- #

def _ref_forward(features, weights_bf16, biases, interp_fn):
    newP = []
    for f, w, b in zip(features, weights_bf16, biases):
        xr = f.astype(jnp.bfloat16).astype(jnp.float32)    # mirror in-kernel rounding
        wr = w.astype(jnp.float32)
        y = jnp.einsum('oc,nchw->nohw', wr, xr) + b[None, :, None, None]
        newP.append(y.astype(jnp.bfloat16))
    for i in range(len(newP) - 1):
        hin, win = newP[i].shape[2:]
        hout, wout = newP[i + 1].shape[2:]
        A, _, Bt = interp_fn(hout, wout, hin, win)
        Ab = A.astype(jnp.bfloat16).astype(jnp.float32)
        Bb = Bt.astype(jnp.bfloat16).astype(jnp.float32)
        x = newP[i].astype(jnp.float32)
        up = jnp.einsum('oi,ncij,jp->ncop', Ab, x, Bb)
        newP[i + 1] = (up + newP[i + 1].astype(jnp.float32)).astype(jnp.bfloat16)
    return [p.astype(jnp.float32) for p in newP]


# ---------------------------------- main ----------------------------------- #

if __name__ == "__main__":
    key = jax.random.PRNGKey(0)
    k1, k2, kp = jax.random.split(key, 3)

    # Two pyramid levels (coarse stride-16 and fine stride-8), NCHW like PyTorch.
    f0 = jax.random.normal(k1, (2, 8, 8, 8), jnp.float32)     # (N=2, C=8,  8,  8)
    f1 = jax.random.normal(k2, (2, 4, 16, 16), jnp.float32)   # (N=2, C=4, 16, 16)
    im_info = jnp.array([[128.0, 128.0, 1.0]], jnp.float32)

    fpn = FPNPallas(num_classes=3, in_channels=(8, 4), feat_strides=(16, 8),
                    out_channel=32, key=kp)

    out_pyramid = fpn([f0, f1], im_info)
    for o in out_pyramid:
        jax.block_until_ready(o)

    assert out_pyramid[0].shape == (2, 32, 8, 8)
    assert out_pyramid[1].shape == (2, 32, 16, 16)

    ref = _ref_forward([f0, f1], fpn.weights_bf16, fpn.biases, fpn._interp)
    for got, want in zip(out_pyramid, ref):
        assert bool(jnp.isfinite(got).all())
        # bf16 intermediates / interp-weight rounding absorbed by 2e-2 tolerance.
        assert bool(jnp.allclose(got, want, atol=2e-2, rtol=2e-2))

    print("KERNEL_OK")
</pallas_src>

<mosaic_0001>
module attributes {stable_mosaic.version = 11 : i64} {
  func.func @_conv1x1_kernel(%arg0: i32, %arg1: i32, %arg2: memref<1x8x64xf32, #tpu.memory_space<vmem>>, %arg3: memref<32x8xbf16, #tpu.memory_space<vmem>>, %arg4: memref<32x1xf32, #tpu.memory_space<vmem>>, %arg5: memref<1x32x64xbf16, #tpu.memory_space<vmem>>) attributes {dimension_semantics = [#tpu.dimension_semantics<parallel>, #tpu.dimension_semantics<parallel>], iteration_bounds = array<i64: 2, 1>, scalar_prefetch = 0 : i64, scratch_operands = 0 : i64, tpu.core_type = #tpu.core_type<tc>, window_params = [{transform_indices = @transform_0, window_bounds = array<i64: 1, 8, 64>}, {pipeline_mode = #tpu.pipeline_mode<synchronous>, transform_indices = @transform_1, window_bounds = array<i64: 32, 8>}, {pipeline_mode = #tpu.pipeline_mode<synchronous>, transform_indices = @transform_2, window_bounds = array<i64: 32, 1>}, {transform_indices = @transform_3, window_bounds = array<i64: 1, 32, 64>}]} {
    %c0 = arith.constant 0 : index
    %c0_0 = arith.constant 0 : index
    %c0_1 = arith.constant 0 : index
    %0 = vector.load %arg2[%c0, %c0_0, %c0_1] : memref<1x8x64xf32, #tpu.memory_space<vmem>>, vector<1x8x64xf32>
    %1 = vector.shape_cast %0 : vector<1x8x64xf32> to vector<8x64xf32>
    %2 = arith.truncf %1 : vector<8x64xf32> to vector<8x64xbf16>
    %c0_2 = arith.constant 0 : index
    %c0_3 = arith.constant 0 : index
    %3 = vector.load %arg3[%c0_2, %c0_3] : memref<32x8xbf16, #tpu.memory_space<vmem>>, vector<32x8xbf16>
    %cst = arith.constant dense<0.000000e+00> : vector<32x64xf32>
    %4 = tpu.matmul %3, %2, %cst {dimension_numbers = #tpu.dot_dimension_numbers<[1], [0], [0], [1], [0, 0, 1, 1], [], []>} : vector<32x8xbf16>, vector<8x64xbf16>, vector<32x64xf32> -> vector<32x64xf32>
    %c0_4 = arith.constant 0 : index
    %c0_5 = arith.constant 0 : index
    %5 = vector.load %arg4[%c0_4, %c0_5] : memref<32x1xf32, #tpu.memory_space<vmem>>, vector<32x1xf32>
    %6 = vector.broadcast %5 : vector<32x1xf32> to vector<32x64xf32>
    %7 = arith.addf %4, %6 : vector<32x64xf32>
    %8 = arith.truncf %7 : vector<32x64xf32> to vector<32x64xbf16>
    %c0_6 = arith.constant 0 : index
    %c0_7 = arith.constant 0 : index
    %c0_8 = arith.constant 0 : index
    %9 = vector.load %arg5[%c0_6, %c0_7, %c0_8] : memref<1x32x64xbf16, #tpu.memory_space<vmem>>, vector<1x32x64xbf16>
    %10 = vector.shape_cast %9 : vector<1x32x64xbf16> to vector<32x64xbf16>
    %11 = vector.shape_cast %8 : vector<32x64xbf16> to vector<1x32x64xbf16>
    tpu.vector_store %arg5[%c0_6, %c0_7, %c0_8], %11 {strides = array<i32>} : memref<1x32x64xbf16, #tpu.memory_space<vmem>>, vector<1x32x64xbf16>,
    return
  }
  func.func @transform_0(%arg0: i32, %arg1: i32) -> (i32, i32, i32) {
    %c0_i32 = arith.constant 0 : i32
    %c0_i32_0 = arith.constant 0 : i32
    return %arg0, %c0_i32, %arg1 : i32, i32, i32
  }
  func.func @transform_1(%arg0: i32, %arg1: i32) -> (i32, i32) {
    %c0_i32 = arith.constant 0 : i32
    %c0_i32_0 = arith.constant 0 : i32
    %c0_i32_1 = arith.constant 0 : i32
    return %c0_i32, %c0_i32_0 : i32, i32
  }
  func.func @transform_2(%arg0: i32, %arg1: i32) -> (i32, i32) {
    %c0_i32 = arith.constant 0 : i32
    %c0_i32_0 = arith.constant 0 : i32
    %c0_i32_1 = arith.constant 0 : i32
    return %c0_i32, %c0_i32_0 : i32, i32
  }
  func.func @transform_3(%arg0: i32, %arg1: i32) -> (i32, i32, i32) {
    %c0_i32 = arith.constant 0 : i32
    %c0_i32_0 = arith.constant 0 : i32
    return %arg0, %c0_i32, %arg1 : i32, i32, i32
  }
}

</mosaic_0001>

<bundles_post_ra>
// kernel: tpu_custom_call.1
= control target key start
LH: loop header
LB: loop body
LE: loop exit
PB: predicated region body
PF: predicated region fallthrough
CT: control target
= control target key end

     0   :  { %8 = vsyncpa [#allocation3], 0  ;;  %s743_s0 = inlined_call_operand.vmem [shape: f32[2,8,64], index: 0, kind: input, shape index: {}]   ;;  %s744_s1 = inlined_call_operand.vmem [shape: bf16[32,8], index: 1, kind: input, shape index: {}]   ;;  %s745_s2 = inlined_call_operand.vmem [shape: f32[32,1], index: 2, kind: input, shape index: {}]   ;;  %s746_s3 = inlined_call_operand.hbm [shape: bf16[2,32,64], index: 3, kind: output, shape index: {}]  }
   0x1   :  { %10 = vsyncpa [#allocation3 + $0x1], 0  ;;  %s604_s12 = smov 0   ;;  %s606_s13 = smov 0  }
   0x2   :  { %s608_s14 = smov 0   ;;  %s610_s15 = smov 0  }
   0x3   :  { %s612_s16 = smov 0   ;;  %s614_s17 = smov 0  }
   0x4 LB: > { %s403_s18 = sadd.s32 4294967295, %s578_s17   ;;  %s404_s19 = sadd.s32 4294967294, %s578_s17   ;;  %s578_s17 = sphi %s614_s17, %s16_s17   ;;  %s574_s16 = sphi %s612_s16, %s753_s16   ;;  %s570_s15 = sphi %s610_s15, %s752_s15   ;;  %s566_s14 = sphi %s608_s14, %s751_s14   ;;  %s562_s13 = sphi %s606_s13, %s750_s13   ;;  %s558_s12 = sphi %s604_s12, %s749_s12  }
   0x5   : > { %s28_s20 = sadd.s32 1, %s574_s16  ;;  %s107_s21 = sadd.s32 1, %s566_s14 }
   0x6   : > { %p30_p0 = scmp.ge.s32.totalorder %s28_s20, 2  ;;  %p117_p1 = scmp.ne.s32.totalorder %s566_s14, %s562_s13 }
   0x7   : > { %p118_p2 = scmp.eq.s32.totalorder %s403_s18, 1  ;;  %p123_p3 = scmp.ne.s32.totalorder %s562_s13, %s558_s12 }
   0x8   : > { %s755_s20 = smov (%p30_p0, %s28_s20), 0  ;;  %p124_p5 = scmp.eq.s32.totalorder %s404_s19, 1 }
   0x9   : > { %p644_p4 = por %p118_p2, %p117_p1  ;;  %s102_s23 = ssub.s32 %s574_s16, %s755_s20 }
   0xa   : > { %p407_p6 = scmp.ge.s32.totalorder %s578_s17, 1  ;;  %p105_p7 = scmp.eq.s32.totalorder %s102_s23, 0 }
   0xb   : > { %p651_p8 = por %p124_p5, %p123_p3  ;;  %p158_p9 = scmp.lt.s32.totalorder %s578_s17, 3 }
   0xc   : > { %s657_s25 = scalar_select %p105_p7, %s566_s14, %s107_s21  }
   0xd   : > { %p159_p10 = pnand %p407_p6, %p158_p9 }
   0xe   : > { %p184_p11 = scmp.lt.s32.totalorder (!%p159_p10), %s570_s15, 1  ;;  %v498_v0 = vld [vmem:[%s744_s1] sm:$0xff] (!%p159_p10)   ;;  %vm232_vm0 = vcmask (!%p159_p10), 64512   ;;  %v200_v1 = vld [vmem:[%s745_s2 + $0x10] sm:$0xff] (!%p159_p10)  ;;  %v580_v3 = vmov (!%p159_p10), 0   ;;  %v201_v4 = vld [vmem:[%s745_s2 + $0x18] sm:$0xff] (!%p159_p10) }
   0xf   : > { %162 = sbr.rel (%p159_p10) target bundleno = 267 (0x10b), region = 32  ;;  %v198_v2 = vld [vmem:[%s745_s2] sm:$0xff] (!%p159_p10)  ;;  %433 = vmatprep.mubr.msk.bf16.mxu0 (!%p159_p10), %vm232_vm0, %v498_v0  ;;  %497 = vset.pattern.permute.xlu1 (!%p159_p10), %v580_v3  ;;  %vm239_vm1 = vcmask (!%p159_p10), 1043456   ;;  %v199_v6 = vld [vmem:[%s745_s2 + $0x8] sm:$0xff] (!%p159_p10)  ;;  %s181_s26 = sand.u32 (!%p159_p10), 1, %s562_s13   ;;  %vm308_vm2 = vcmask (!%p159_p10), 519168  }
  0x10   : > { %496 = vset.pattern.permute.xlu0 (!%p159_p10), %v580_v3  ;;  %214 = vperm.xlu1 (!%p159_p10), %497, %v200_v1   ;;  %v499_v9 = vld [vmem:[%s744_s1 + $0x8] sm:$0xff] (!%p159_p10)   ;;  %s408_s27 = sshll.u32 (!%p159_p10), %s181_s26, 4  ;;  %s427_s30 = sshll.u32 (!%p159_p10), %s570_s15, 8 }
  0x11   : > { %204 = vperm.xlu0 (!%p159_p10), %496, %v198_v2   ;;  %s581_s8 = smov (!%p159_p10), [#allocation2]  }
  0x14   : > { %219 = vperm.xlu1 (!%p159_p10), %497, %v201_v4  }
  0x15   : > { %209 = vperm.xlu0 (!%p159_p10), %496, %v199_v6  }
  0x16   : > { %s185_s28 = scalar_select %p184_p11, %s570_s15, 1 }
  0x17   : > { %s697_s15 = scalar_lea.sflag [#allocation3], %s181_s26 }
  0x18   : > { %s409_s6 = sshll.u32 %s185_s28, 3  ;;  %s183_s28 = scalar_lea.vmem [#allocation2], %s408_s27 }
  0x19   : > { %s190_s9 = scalar_lea.vmem %s743_s0, %s409_s6  ;;  %s328_s29 = sshll.u32 %s183_s28, 4  ;;  %s687_s29 = int_to_ptr.vmem [resolvable:$true] %s328_s29 }
  0x1a   : > { %v192_v5 = vld [vmem:[%s190_s9] sm:$0xff]  ;;  %s692_s6 = scalar_lea.hbm %s746_s3, %s427_s30  ;;  %s500_s7 = scalar_lea.vmem %s687_s29, 256 }
  0x1b   : > { %v193_v7 = vpack.c.bf16 %v192_v5, %v192_v5  ;;  %p501_p12 = scmp.ne.s32.totalorder %s687_s29, %s500_s7  ;;  %s504_s9 = sshll.u32 %s581_s8, 4  ;;  %s505_s9 = int_to_ptr.vmem [resolvable:$false] %s504_s9 }
  0x1c   : > { %s506_s10 = scalar_lea.vmem %s505_s9, 512  ;;  %p507_p1 = scmp.lt.s32.totalorder %s687_s29, %s505_s9 }
  0x1d   : > { %437 = vmatprep.subr.msk.bf16.mxu0 %vm239_vm1, %v193_v7  ;;  %v241_v8 = vsel %vm239_vm1, %v193_v7, 0  ;;  %p502_p13 = pnand %p501_p12, %p644_p4  ;;  %p508_p2 = scmp.lt.s32.totalorder %s506_s10, %s500_s7 }
  0x1e   : > { %432 = vmatpush3.bf16.msra.mxu0 %v241_v8 }
  0x1f   : > { %p503_p0 = pneg %p502_p13  ;;  %p509_p3 = por %p508_p2, %p507_p1 }
  0x21   : > { %434 = vmatmul.mubr.msk.bf16.vlgmr.msra.gmra.mrb[0].mxu0 %vm232_vm0, %v499_v9  ;;  %p510_p5 = pnand %p509_p3, %p503_p0 }
  0x8f   : > { %v215_v10 = vpop.permute.xlu1 %214 }
  0x90   : > { %v205_v11 = vpop.permute.xlu0 %204 }
  0x93   : > { %v220_v15 = vpop.permute.xlu1 %219 }
  0x94   : > { %v210_v18 = vpop.permute.xlu0 %209 }
  0xf4   : > { %v435_v12 = vpop.f32.mrb[0].mxu0 }
  0xf5   : > { %v286_v13 = vadd.f32 %v435_v12, %v215_v10  ;;  %v277_v14 = vpop.f32.mrb[1].mxu0 }
  0xf6   : > { %v278_v16 = vadd.f32 %v277_v14, %v205_v11  ;;  %v436_v17 = vpop.f32.mrb[2].mxu0 }
  0xf7   : > { %v425_v19 = vpack.c.bf16 %v286_v13, %v286_v13  ;;  %v289_v20 = vadd.f32 %v436_v17, %v220_v15  ;;  %v280_v21 = vpop.f32.mrb[3].mxu0 }
  0xf8   : > { %v423_v22 = vpack.c.bf16 %v278_v16, %v278_v16  ;;  %v281_v23 = vadd.f32 %v280_v21, %v210_v18 }
  0xf9   : > { %311 = vst.msk [vmem:[%s183_s28 + $0x8] sm:$0xf] %vm308_vm2, %v425_v19  ;;  %v426_v24 = vpack.c.bf16 %v289_v20, %v289_v20 }
  0xfa   : > { %309 = vst.msk [vmem:[%s183_s28] sm:$0xf] %vm308_vm2, %v423_v22  ;;  %v424_v25 = vpack.c.bf16 %v281_v23, %v281_v23 }
  0xfb   : > { %312 = vst.msk [vmem:[%s183_s28 + $0xc] sm:$0xf] %vm308_vm2, %v426_v24 }
  0xfc   : > { %310 = vst.msk [vmem:[%s183_s28 + $0x4] sm:$0xf] %vm308_vm2, %v424_v25 }
  0xfd   : > { %513 = shalt.err (!%p510_p5)
}
  0xfe   : > { %s514_s11 = scalar_lea.hbm %s692_s6, 256  ;;  %s518_s21 = scalar_lea.hbm %s746_s3, 512 }
  0xff   : > { %p515_p6 = scmp.ne.s32.totalorder %s692_s6, %s514_s11  ;;  %p519_p10 = scmp.lt.u32.totalorder %s692_s6, %s746_s3 }
 0x100   : > { %p520_p11 = scmp.lt.u32.totalorder %s518_s21, %s514_s11  ;;  %p522_p13 = scmp.lt.u32.totalorder %s514_s11, %s692_s6 }
 0x101   : > { %p516_p7 = pnand %p515_p6, %p644_p4 }
 0x102   : > { %p521_p12 = por %p520_p11, %p519_p10 }
 0x103   : > { %p517_p9 = pneg %p516_p7 }
 0x104   : > { %p523_p0 = por %p522_p13, %p521_p12 }
 0x106   : > { %p524_p1 = pnand %p523_p0, %p517_p9 }
 0x108   : > { %527 = shalt.err (!%p524_p1)
}
 0x109   : > { %s582_s27 = smov 64   ;;  %s583_s28 = smov 4  }
 0x10a   : > { %438 = dma.vmem_to_hbm [thread:$0]  (%p644_p4), %s687_s29, 256, %s692_s6, %s697_s15, %s582_s27, %s582_s27, %s583_s28  }
 0x10b PF: > { %p444_p2 = scmp.ge.s32.totalorder %s578_s17, 2  ;;  %s343_s30 = sand.u32 1, %s558_s12  }
 0x10c   : > { %s344_s4 = scalar_lea.sflag [#allocation3], %s343_s30 }
 0x10d   : > { %p441_p3 = pnand %p444_p2, %p651_p8 }
 0x10f   : > { %553 = dma.done.wait (!%p441_p3), %s344_s4, 256  }
 0x110   : > { %555 = vsyncadd (!%p441_p3), %s344_s4, 4294967040  ;;  %s16_s17 = sadd.s32 1, %s578_s17   ;;  %s749_s12 = smov %s562_s13 }
 0x111   : > { %p13_p5 = scmp.ge.s32.totalorder %s16_s17, 4   ;;  %s750_s13 = smov %s566_s14 }
 0x112   : > { %s751_s14 = smov %s657_s25  ;;  %s752_s15 = smov %s574_s16 }
 0x113   : > { %s753_s16 = smov %s755_s20  ;;  %15 = sbr.rel (!%p13_p5) target bundleno = 4 (0x4), region = 67 }
 0x11a   :  { %349 = vsyncpa [#allocation3], 1 }
 0x11b   :  { %351 = vsyncpa [#allocation3 + $0x1], 1 }

</bundles_post_ra>
